<compile_context>
chip_gen: v7x
topology: tpu7x:2x2x1
jax: 0.10.0
libtpu: 0.0.40
codegen_flags: <defaults>
</compile_context>

<pallas_src>
import functools

import jax
import jax.numpy as jnp
from jax import lax
from jax.experimental import pallas as pl
from jax.experimental.pallas import tpu as pltpu

BN_EPS = 1e-5
NUM_CORES = 2  # leading "parallel" grid axis; uses both TCs on v7x, benign on v5e/v6e


def _batchnorm_train(h, gamma, beta):
    mu = jnp.mean(h, axis=0, keepdims=True)
    var = jnp.mean((h - mu) * (h - mu), axis=0, keepdims=True)  # biased variance
    return (h - mu) * lax.rsqrt(var + BN_EPS) * gamma + beta


def _leaky_relu(h, slope):
    return jnp.where(h > 0, h, slope * h)


# ---------------------------------------------------------------------------
# Kernel 1: streaming scatter-sum + count.  grid = (NUM_CORES, chunks_per_core)
# Each step DMAs one (TN, Fin) chunk of x and a (1, TN) chunk of batch ids,
# builds a (B, TN) one-hot matrix, and does one MXU dot + one lane-reduce into
# per-core resident accumulators (the output blocks).
# ---------------------------------------------------------------------------
def pool_kernel(batch_ref, x_ref, sums_ref, counts_ref, *, n_nodes, num_graphs):
    c = pl.program_id(0)            # core slice
    k = pl.program_id(1)            # local node-chunk index
    kpc = pl.num_programs(1)
    gchunk = c * kpc + k            # global node-chunk index
    tn = x_ref.shape[0]

    @pl.when(k == 0)
    def _():
        sums_ref[...] = jnp.zeros_like(sums_ref)
        counts_ref[...] = jnp.zeros_like(counts_ref)

    # Mask ragged-tail / clamped-duplicate rows BEFORE the dot (0 * NaN = NaN).
    row_ids = gchunk * tn + lax.broadcasted_iota(jnp.int32, (tn, 1), 0)   # (TN,1)
    row_valid = row_ids < n_nodes
    xv = jnp.where(row_valid, x_ref[...].astype(jnp.float32), 0.0)        # (TN,Fin)

    batch = batch_ref[...]                                                # (1, TN)
    gid = lax.broadcasted_iota(jnp.int32, (num_graphs, tn), 0)
    one_hot = (gid == batch).astype(jnp.float32)                          # (B, TN); pad ids=-1 -> 0

    sums_ref[...] += jnp.dot(one_hot, xv, preferred_element_type=jnp.float32)
    counts_ref[...] += jnp.sum(one_hot, axis=1, keepdims=True)


# ---------------------------------------------------------------------------
# Kernel 2: tiny finalize (runs once, no grid): reduce partial accumulators,
# divide by counts, then BN -> Linear -> LeakyReLU (x2) -> BN -> Linear.
# ---------------------------------------------------------------------------
def mlp_kernel(sums_ref, counts_ref,
               g1_ref, b1_ref, w1_ref, bb1_ref,
               g2_ref, b2_ref, w2_ref, bb2_ref,
               g3_ref, b3_ref, w3_ref, bb3_ref,
               out_ref, *, leakiness):
    sums = sums_ref[0]
    counts = counts_ref[0]
    for cc in range(1, sums_ref.shape[0]):
        sums = sums + sums_ref[cc]
        counts = counts + counts_ref[cc]
    pooled = sums / jnp.maximum(counts, 1.0)        # empty graph -> 0

    h = _batchnorm_train(pooled, g1_ref[...], b1_ref[...])
    h = jnp.dot(h, w1_ref[...], preferred_element_type=jnp.float32) + bb1_ref[...]
    h = _leaky_relu(h, leakiness)

    h = _batchnorm_train(h, g2_ref[...], b2_ref[...])
    h = jnp.dot(h, w2_ref[...], preferred_element_type=jnp.float32) + bb2_ref[...]
    h = _leaky_relu(h, leakiness)

    h = _batchnorm_train(h, g3_ref[...], b3_ref[...])
    h = jnp.dot(h, w3_ref[...], preferred_element_type=jnp.float32) + bb3_ref[...]

    out_ref[...] = h.astype(out_ref.dtype)


def global_model_forward(x, batch, params, *, num_graphs, leakiness=0.0,
                         node_chunk=8192, vmem_limit_bytes=64 * 1024 * 1024):
    """x: [N, node_in], batch: [N] int32 in [0, num_graphs)."""
    n_nodes, node_in = x.shape
    node_out = params["w3"].shape[1]

    # Node-chunk: multiple of 128 so the (1, TN) batch block is lane-aligned.
    # Default 8192 amortizes the ~0.35 us/step pipeline overhead; tune lower on
    # v5e (16 MiB scoped-VMEM default, slower HBM) and watch VMEM on v7x.
    tn = max(128, ((node_chunk + 127) // 128) * 128)
    num_x_blocks = -(-n_nodes // tn)
    chunks_per_core = -(-num_x_blocks // NUM_CORES)
    total_chunks = NUM_CORES * chunks_per_core
    total_n = total_chunks * tn

    # Only the tiny batch-id array is padded (ids=-1 never match a graph id).
    pad = total_n - n_nodes
    batch_i32 = batch.astype(jnp.int32)
    if pad:
        batch_i32 = jnp.pad(batch_i32, (0, pad), constant_values=-1)
    batch_2d = batch_i32.reshape(1, total_n)

    def batch_map(c, k, _cpc=chunks_per_core):
        return (0, c * _cpc + k)

    def x_map(c, k, _cpc=chunks_per_core, _last=num_x_blocks - 1):
        # Clamp so the (at most NUM_CORES-1) overhang chunks never DMA out of
        # bounds; their contribution is zeroed by the in-kernel row mask.
        return (jnp.minimum(c * _cpc + k, _last), 0)

    sums, counts = pl.pallas_call(
        functools.partial(pool_kernel, n_nodes=n_nodes, num_graphs=num_graphs),
        out_shape=(
            jax.ShapeDtypeStruct((NUM_CORES, num_graphs, node_in), jnp.float32),
            jax.ShapeDtypeStruct((NUM_CORES, num_graphs, 1), jnp.float32),
        ),
        grid=(NUM_CORES, chunks_per_core),
        in_specs=[
            pl.BlockSpec((1, tn), batch_map),          # batch ids chunk
            pl.BlockSpec((tn, node_in), x_map),        # x node chunk (no host copy)
        ],
        out_specs=(
            pl.BlockSpec((None, num_graphs, node_in), lambda c, k: (c, 0, 0)),
            pl.BlockSpec((None, num_graphs, 1), lambda c, k: (c, 0, 0)),
        ),
        compiler_params=pltpu.CompilerParams(
            dimension_semantics=("parallel", "arbitrary"),
            vmem_limit_bytes=vmem_limit_bytes,
        ),
        cost_estimate=pl.CostEstimate(
            flops=2 * n_nodes * num_graphs * node_in,
            transcendentals=0,
            bytes_accessed=n_nodes * (node_in * x.dtype.itemsize + 4)
            + 2 * NUM_CORES * num_graphs * (node_in + 1) * 4,
        ),
    )(batch_2d, x)

    param_inputs = (
        params["g1"], params["b1"], params["w1"], params["bb1"],
        params["g2"], params["b2"], params["w2"], params["bb2"],
        params["g3"], params["b3"], params["w3"], params["bb3"],
    )
    out = pl.pallas_call(
        functools.partial(mlp_kernel, leakiness=leakiness),
        out_shape=jax.ShapeDtypeStruct((num_graphs, node_out), jnp.float32),
    )(sums, counts, *param_inputs)
    return out


def init_params(key, node_in, node_out):
    ks = jax.random.split(key, 12)

    def linear(kw, kb, fan_in, fan_out):
        # PyTorch nn.Linear default init: U(-1/sqrt(fan_in), 1/sqrt(fan_in))
        bound = 1.0 / jnp.sqrt(fan_in)
        w = jax.random.uniform(kw, (fan_in, fan_out), jnp.float32, -bound, bound)
        b = jax.random.uniform(kb, (1, fan_out), jnp.float32, -bound, bound)
        return w, b

    w1, bb1 = linear(ks[0], ks[1], node_in, node_out)
    w2, bb2 = linear(ks[2], ks[3], node_out, node_out)
    w3, bb3 = linear(ks[4], ks[5], node_out, node_out)

    def bn(kg, kb, f):
        g = 1.0 + 0.1 * jax.random.normal(kg, (1, f), jnp.float32)
        b = 0.1 * jax.random.normal(kb, (1, f), jnp.float32)
        return g, b

    g1, b1 = bn(ks[6], ks[7], node_in)
    g2, b2 = bn(ks[8], ks[9], node_out)
    g3, b3 = bn(ks[10], ks[11], node_out)

    return dict(
        g1=g1, b1=b1, w1=w1, bb1=bb1,
        g2=g2, b2=b2, w2=w2, bb2=bb2,
        g3=g3, b3=b3, w3=w3, bb3=bb3,
    )


def reference_forward(x, batch, params, *, num_graphs, leakiness=0.0):
    hp = lax.Precision.HIGHEST
    one_hot = (jnp.arange(num_graphs)[:, None] == batch[None, :]).astype(jnp.float32)
    pooled = jnp.matmul(one_hot, x, precision=hp) / jnp.maximum(
        one_hot.sum(1, keepdims=True), 1.0)

    def bn(h, g, b):
        mu = h.mean(0, keepdims=True)
        var = ((h - mu) ** 2).mean(0, keepdims=True)
        return (h - mu) / jnp.sqrt(var + BN_EPS) * g + b

    def lrelu(h):
        return jnp.where(h > 0, h, leakiness * h)

    h = lrelu(jnp.matmul(bn(pooled, params["g1"], params["b1"]), params["w1"],
                         precision=hp) + params["bb1"])
    h = lrelu(jnp.matmul(bn(h, params["g2"], params["b2"]), params["w2"],
                         precision=hp) + params["bb2"])
    h = jnp.matmul(bn(h, params["g3"], params["b3"]), params["w3"],
                   precision=hp) + params["bb3"]
    return h


if __name__ == "__main__":
    node_in, node_out = 32, 32
    num_nodes, num_graphs = 200, 4
    leakiness = 0.1
    node_chunk = 128  # small for the test: 2 node chunks -> one per core, ragged tail

    key = jax.random.PRNGKey(0)
    kx, kb, kp = jax.random.split(key, 3)
    x = jax.random.normal(kx, (num_nodes, node_in), jnp.float32)
    batch = jax.random.randint(kb, (num_nodes,), 0, num_graphs, jnp.int32)
    params = init_params(kp, node_in, node_out)

    out = global_model_forward(
        x, batch, params, num_graphs=num_graphs, leakiness=leakiness,
        node_chunk=node_chunk,
    )
    out = jax.block_until_ready(out)
    ref = reference_forward(x, batch, params, num_graphs=num_graphs,
                            leakiness=leakiness)
    assert out.shape == (num_graphs, node_out)
    assert jnp.allclose(out, ref, atol=1e-4, rtol=1e-4), "mismatch vs JAX reference"

    # Second config exercises the clamped-duplicate-chunk path (N < TN: core 1's
    # chunk is fully masked and must contribute nothing).
    x2, batch2 = x[:100], batch[:100]
    out2 = jax.block_until_ready(global_model_forward(
        x2, batch2, params, num_graphs=num_graphs, leakiness=leakiness,
        node_chunk=node_chunk))
    ref2 = reference_forward(x2, batch2, params, num_graphs=num_graphs,
                             leakiness=leakiness)
    assert jnp.allclose(out2, ref2, atol=1e-4, rtol=1e-4), "mismatch (masked path)"

    # TODO(synk): BatchNorm running-stat (running_mean/var momentum) buffer updates
    # are not modeled; only the training-mode forward (batch statistics) is reproduced.
    print("KERNEL_OK")
</pallas_src>

<mosaic_0001>
module attributes {stable_mosaic.version = 11 : i64} {
  func.func @pool_kernel(%arg0: i32, %arg1: i32, %arg2: memref<1x128xi32, #tpu.memory_space<vmem>>, %arg3: memref<128x32xf32, #tpu.memory_space<vmem>>, %arg4: memref<1x4x32xf32, #tpu.memory_space<vmem>>, %arg5: memref<1x4x1xf32, #tpu.memory_space<vmem>>) attributes {dimension_semantics = [#tpu.dimension_semantics<parallel>, #tpu.dimension_semantics<arbitrary>], iteration_bounds = array<i64: 2, 1>, scalar_prefetch = 0 : i64, scratch_operands = 0 : i64, tpu.core_type = #tpu.core_type<tc>, window_params = [{transform_indices = @transform_0, window_bounds = array<i64: 1, 128>}, {transform_indices = @transform_1, window_bounds = array<i64: 128, 32>}, {transform_indices = @transform_2, window_bounds = array<i64: 1, 4, 32>}, {transform_indices = @transform_3, window_bounds = array<i64: 1, 4, 1>}]} {
    %c1_i32 = arith.constant 1 : i32
    %0 = arith.muli %arg0, %c1_i32 : i32
    %1 = arith.addi %0, %arg1 : i32
    %c0_i32 = arith.constant 0 : i32
    %2 = arith.cmpi eq, %arg1, %c0_i32 : i32
    %3 = arith.extui %2 : i1 to i32
    %c0_i32_0 = arith.constant 0 : i32
    %4 = arith.cmpi ne, %3, %c0_i32_0 : i32
    scf.if %4 {
      %cst_18 = arith.constant 0.000000e+00 : f32
      %37 = vector.broadcast %cst_18 : f32 to vector<4x32xf32>
      %c0_19 = arith.constant 0 : index
      %c0_20 = arith.constant 0 : index
      %c0_21 = arith.constant 0 : index
      %38 = vector.load %arg4[%c0_19, %c0_20, %c0_21] : memref<1x4x32xf32, #tpu.memory_space<vmem>>, vector<1x4x32xf32>
      %39 = vector.shape_cast %38 : vector<1x4x32xf32> to vector<4x32xf32>
      %40 = vector.shape_cast %37 : vector<4x32xf32> to vector<1x4x32xf32>
      tpu.vector_store %arg4[%c0_19, %c0_20, %c0_21], %40 {strides = array<i32>} : memref<1x4x32xf32, #tpu.memory_space<vmem>>, vector<1x4x32xf32>,
      %cst_22 = arith.constant 0.000000e+00 : f32
      %41 = vector.broadcast %cst_22 : f32 to vector<4x1xf32>
      %c0_23 = arith.constant 0 : index
      %c0_24 = arith.constant 0 : index
      %c0_25 = arith.constant 0 : index
      %42 = vector.load %arg5[%c0_23, %c0_24, %c0_25] : memref<1x4x1xf32, #tpu.memory_space<vmem>>, vector<1x4x1xf32>
      %43 = vector.shape_cast %42 : vector<1x4x1xf32> to vector<4x1xf32>
      %44 = vector.shape_cast %41 : vector<4x1xf32> to vector<1x4x1xf32>
      tpu.vector_store %arg5[%c0_23, %c0_24, %c0_25], %44 {strides = array<i32>} : memref<1x4x1xf32, #tpu.memory_space<vmem>>, vector<1x4x1xf32>,
    } else {
    }
    %c128_i32 = arith.constant 128 : i32
    %5 = arith.muli %1, %c128_i32 : i32
    %6 = tpu.iota {dimensions = array<i32: 0>} : vector<128x1xi32>
    %7 = vector.broadcast %5 : i32 to vector<128x1xi32>
    %8 = arith.addi %7, %6 : vector<128x1xi32>
    %c200_i32 = arith.constant 200 : i32
    %9 = vector.broadcast %c200_i32 : i32 to vector<128x1xi32>
    %10 = arith.cmpi slt, %8, %9 : vector<128x1xi32>
    %c0 = arith.constant 0 : index
    %c0_1 = arith.constant 0 : index
    %11 = vector.load %arg3[%c0, %c0_1] : memref<128x32xf32, #tpu.memory_space<vmem>>, vector<128x32xf32>
    %cst = arith.constant 0.000000e+00 : f32
    %12 = vector.shape_cast %10 : vector<128x1xi1> to vector<128x1xi1>
    %13 = vector.broadcast %12 : vector<128x1xi1> to vector<128x32xi1>
    %14 = vector.broadcast %cst : f32 to vector<128x32xf32>
    %15 = arith.select %13, %11, %14 : vector<128x32xi1>, vector<128x32xf32>
    %c0_2 = arith.constant 0 : index
    %c0_3 = arith.constant 0 : index
    %16 = vector.load %arg2[%c0_2, %c0_3] : memref<1x128xi32, #tpu.memory_space<vmem>>, vector<1x128xi32>
    %17 = tpu.iota {dimensions = array<i32: 0>} : vector<4x128xi32>
    %18 = vector.broadcast %16 : vector<1x128xi32> to vector<4x128xi32>
    %19 = arith.cmpi eq, %17, %18 : vector<4x128xi32>
    %20 = arith.extui %19 : vector<4x128xi1> to vector<4x128xi32>
    %21 = arith.sitofp %20 : vector<4x128xi32> to vector<4x128xf32>
    %c0_4 = arith.constant 0 : index
    %c0_5 = arith.constant 0 : index
    %c0_6 = arith.constant 0 : index
    %22 = vector.load %arg4[%c0_4, %c0_5, %c0_6] : memref<1x4x32xf32, #tpu.memory_space<vmem>>, vector<1x4x32xf32>
    %23 = vector.shape_cast %22 : vector<1x4x32xf32> to vector<4x32xf32>
    %cst_7 = arith.constant dense<0.000000e+00> : vector<4x32xf32>
    %24 = tpu.matmul %21, %15, %cst_7 {dimension_numbers = #tpu.dot_dimension_numbers<[1], [0], [0], [1], [0, 0, 1, 1], [], []>} : vector<4x128xf32>, vector<128x32xf32>, vector<4x32xf32> -> vector<4x32xf32>
    %25 = arith.addf %23, %24 : vector<4x32xf32>
    %c0_8 = arith.constant 0 : index
    %c0_9 = arith.constant 0 : index
    %c0_10 = arith.constant 0 : index
    %26 = vector.load %arg4[%c0_8, %c0_9, %c0_10] : memref<1x4x32xf32, #tpu.memory_space<vmem>>, vector<1x4x32xf32>
    %27 = vector.shape_cast %26 : vector<1x4x32xf32> to vector<4x32xf32>
    %28 = vector.shape_cast %25 : vector<4x32xf32> to vector<1x4x32xf32>
    tpu.vector_store %arg4[%c0_8, %c0_9, %c0_10], %28 {strides = array<i32>} : memref<1x4x32xf32, #tpu.memory_space<vmem>>, vector<1x4x32xf32>,
    %c0_11 = arith.constant 0 : index
    %c0_12 = arith.constant 0 : index
    %c0_13 = arith.constant 0 : index
    %29 = vector.load %arg5[%c0_11, %c0_12, %c0_13] : memref<1x4x1xf32, #tpu.memory_space<vmem>>, vector<1x4x1xf32>
    %30 = vector.shape_cast %29 : vector<1x4x1xf32> to vector<4x1xf32>
    %cst_14 = arith.constant dense<0.000000e+00> : vector<4xf32>
    %31 = vector.multi_reduction <add>, %21, %cst_14 [1] : vector<4x128xf32> to vector<4xf32>
    %32 = vector.shape_cast %31 : vector<4xf32> to vector<4x1xf32>
    %33 = arith.addf %30, %32 : vector<4x1xf32>
    %c0_15 = arith.constant 0 : index
    %c0_16 = arith.constant 0 : index
    %c0_17 = arith.constant 0 : index
    %34 = vector.load %arg5[%c0_15, %c0_16, %c0_17] : memref<1x4x1xf32, #tpu.memory_space<vmem>>, vector<1x4x1xf32>
    %35 = vector.shape_cast %34 : vector<1x4x1xf32> to vector<4x1xf32>
    %36 = vector.shape_cast %33 : vector<4x1xf32> to vector<1x4x1xf32>
    tpu.vector_store %arg5[%c0_15, %c0_16, %c0_17], %36 {strides = array<i32>} : memref<1x4x1xf32, #tpu.memory_space<vmem>>, vector<1x4x1xf32>,
    return
  }
  func.func @transform_0(%arg0: i32, %arg1: i32) -> (i32, i32) {
    %c1_i32 = arith.constant 1 : i32
    %0 = arith.muli %arg0, %c1_i32 : i32
    %1 = arith.addi %0, %arg1 : i32
    %c0_i32 = arith.constant 0 : i32
    %c0_i32_0 = arith.constant 0 : i32
    return %c0_i32, %1 : i32, i32
  }
  func.func @transform_1(%arg0: i32, %arg1: i32) -> (i32, i32) {
    %c1_i32 = arith.constant 1 : i32
    %0 = arith.muli %arg0, %c1_i32 : i32
    %1 = arith.addi %0, %arg1 : i32
    %c1_i32_0 = arith.constant 1 : i32
    %2 = arith.minsi %1, %c1_i32_0 : i32
    %c0_i32 = arith.constant 0 : i32
    %c0_i32_1 = arith.constant 0 : i32
    return %2, %c0_i32 : i32, i32
  }
  func.func @transform_2(%arg0: i32, %arg1: i32) -> (i32, i32, i32) {
    %c0_i32 = arith.constant 0 : i32
    %c0_i32_0 = arith.constant 0 : i32
    %c0_i32_1 = arith.constant 0 : i32
    return %arg0, %c0_i32, %c0_i32_0 : i32, i32, i32
  }
  func.func @transform_3(%arg0: i32, %arg1: i32) -> (i32, i32, i32) {
    %c0_i32 = arith.constant 0 : i32
    %c0_i32_0 = arith.constant 0 : i32
    %c0_i32_1 = arith.constant 0 : i32
    return %arg0, %c0_i32, %c0_i32_0 : i32, i32, i32
  }
}

</mosaic_0001>

<bundles_post_ra>
// kernel: tpu_custom_call.1
= control target key start
LH: loop header
LB: loop body
LE: loop exit
PB: predicated region body
PF: predicated region fallthrough
CT: control target
= control target key end

     0   :  { %9 = vsyncpa [#allocation3], 0  ;;  %s1499_s0 = inlined_call_operand.hbm [shape: s32[1,256], index: 0, kind: input, shape index: {}]   ;;  %s1500_s1 = inlined_call_operand.hbm [shape: f32[200,32], index: 1, kind: input, shape index: {}]   ;;  %s1501_s2 = inlined_call_operand.hbm [shape: f32[2,4,32], index: 2, kind: output, shape index: {0}]   ;;  %s1502_s3 = inlined_call_operand.hbm [shape: f32[2,4,1], index: 3, kind: output, shape index: {1}]  }
   0x1   :  { %11 = vsyncpa [#allocation3 + $0x1], 0 }
   0x2   :  { %12 = vsyncpa [#allocation6], 0 }
   0x3   :  { %14 = vsyncpa [#allocation6 + $0x1], 0 }
   0x4   :  { %15 = vsyncpa [#allocation4], 0 }
   0x5   :  { %17 = vsyncpa [#allocation4 + $0x1], 0 }
   0x6   :  { %18 = vsyncpa [#allocation9], 0 }
   0x7   :  { %20 = vsyncpa [#allocation9 + $0x1], 0  ;;  %s1100_s12 = smov 0   ;;  %s1102_s13 = smov 0  }
   0x8   :  { %s1104_s14 = smov 0   ;;  %s1106_s15 = smov 0  }
   0x9   :  { %s1108_s16 = smov 0   ;;  %s1110_s17 = smov 0  }
   0xa   :  { %s1112_s18 = smov 0   ;;  %s1114_s19 = smov 0  }
   0xb   :  { %s1116_s20 = smov 0  }
   0xc LB: > { %1510 = sst [smem:[#allocation14_spill]] %s1064_s19  ;;  %s650_s21 = sadd.s32 4294967295, %s1068_s20   ;;  %s1068_s20 = sphi %s1116_s20, %s26_s20   ;;  %s1064_s19 = sphi %s1114_s19, %s1529_s19   ;;  %s1060_s18 = sphi %s1112_s18, %s1528_s18   ;;  %s1056_s17 = sphi %s1110_s17, %s1535_s17   ;;  %s1052_s16 = sphi %s1108_s16, %s1534_s16   ;;  %s1048_s15 = sphi %s1106_s15, %s1533_s15   ;;  %s1044_s14 = sphi %s1104_s14, %s1532_s14   ;;  %s1040_s13 = sphi %s1102_s13, %s1531_s13   ;;  %s1036_s12 = sphi %s1100_s12, %s1530_s12  }
   0xd   : > { %s651_s22 = sadd.s32 4294967294, %s1068_s20   ;;  %s38_s23 = sadd.s32 1, %s1064_s19 }
   0xe   : > { %s47_s24 = sadd.s32 1, %s1056_s17  ;;  %p40_p0 = scmp.ge.s32.totalorder %s38_s23, 2 }
   0xf   : > { %p54_p1 = scmp.ne.s32.totalorder %s1056_s17, %s1052_s16  ;;  %p55_p2 = scmp.eq.s32.totalorder %s1068_s20, 0 }
  0x10   : > { %p1503_p3 = scmp.ne.s32.totalorder %s1052_s16, %s1048_s15  ;;  %s1537_s23 = smov (%p40_p0, %s38_s23), 0 }
  0x11   : > { %1511 = sst [smem:[#allocation15_spill]] %s1537_s23  ;;  %p1161_p4 = por %p55_p2, %p54_p1 }
  0x12   : > { %p1165_p5 = scmp.eq.s32.totalorder %s650_s21, 0  ;;  %s44_s27 = ssub.s32 %s1064_s19, %s1537_s23 }
  0x13   : > { %p71_p6 = scmp.lt.s32.totalorder %s1064_s19, 1  ;;  %p45_p7 = scmp.eq.s32.totalorder %s44_s27, 0 }
  0x14   : > { %p1177_p8 = por %p1165_p5, %p1503_p3  ;;  %p74_p9 = scmp.lt.s32.totalorder %s1537_s23, 1 }
  0x15   : > { %s1182_s29 = scalar_select %p71_p6, %s1064_s19, 1 }
  0x16   : > { %s1514_s28 = scalar_select %p1177_p8, 1, 0 }
  0x17   : > { %s1185_s30 = scalar_select %p45_p7, %s1056_s17, %s47_s24  }
  0x18   : > { %s79_s4 = sadd.s32 1, %s1044_s14  ;;  %p86_p10 = scmp.ne.s32.totalorder %s1044_s14, %s1040_s13 }
  0x19   : > { %1515 = sst [smem:[#allocation16_spill]] %s1185_s30  ;;  %p92_p11 = scmp.ne.s32.totalorder %s1040_s13, %s1036_s12 }
  0x1a   : > { %s75_s5 = scalar_select %p74_p9, %s1537_s23, 1 }
  0x1b   : > { %p1196_p12 = por %p86_p10, %p55_p2  ;;  %p1202_p13 = por %p92_p11, %p1165_p5 }
  0x1c   : > { %s76_s8 = ssub.s32 %s1182_s29, %s75_s5  ;;  %p116_p0 = scmp.eq.s32.totalorder %s650_s21, 1 }
  0x1d   : > { %s1516_s6 = scalar_select %p1196_p12, 1, 0 }
  0x1e   : > { %s1517_s7 = scalar_select %p1202_p13, 1, 0 }
  0x1f   : > { %p77_p6 = scmp.eq.s32.totalorder %s76_s8, 0  ;;  %p122_p7 = scmp.eq.s32.totalorder %s651_s22, 1 }
  0x20   : > { %p1210_p3 = por %p116_p0, %p54_p1  ;;  %p1519_p2 = scmp.ne.s32.totalorder %s1052_s16, %s1048_s15 }
  0x21   : > { %s1215_s10 = scalar_select %p77_p6, %s1044_s14, %s79_s4  }
  0x22   : > { %s1518_s9 = scalar_select %p1210_p3, 1, 0 }
  0x23   : > { %p1220_p9 = por %p122_p7, %p1519_p2  ;;  %p1506_p5 = scmp.ge.s32.totalorder %s1068_s20, 2 }
  0x24   : > { %s168_s12 = sand.u32 (!%p1506_p5), 1, %s1056_s17   ;;  %s654_s21 = sshll.u32 (!%p1506_p5), %s1064_s19, 4 }
  0x25   : > { %s1520_s11 = scalar_select %p1220_p9, 1, 0 }
  0x26   : > { %164 = sbr.rel (%p1506_p5) target bundleno = 99 (0x63), region = 16  ;;  %s1232_s26 = scalar_lea.hbm (!%p1506_p5), %s1499_s0, %s654_s21 }
  0x27   : > { %s171_s27 = scalar_lea.vmem (!%p1506_p5), [#allocation2], %s168_s12  ;;  %s169_s5 = scalar_lea.sflag (!%p1506_p5), [#allocation3], %s168_s12 }
  0x28   : > { %s179_s4 = sshll.u32 (!%p1506_p5), %s171_s27, 4  ;;  %s870_s8 = scalar_lea.hbm (!%p1506_p5), %s1232_s26, 16  ;;  %s180_s4 = int_to_ptr.vmem [resolvable:$true] %s179_s4 }
  0x29   : > { %p871_p1 = scmp.ne.s32.totalorder (!%p1506_p5), %s1232_s26, %s870_s8  ;;  %s874_s30 = scalar_lea.hbm (!%p1506_p5), %s1499_s0, 32 }
  0x2a   : > { %p875_p0 = scmp.lt.u32.totalorder (!%p1506_p5), %s1232_s26, %s1499_s0  ;;  %p876_p6 = scmp.lt.u32.totalorder (!%p1506_p5), %s874_s30, %s870_s8 }
  0x2b   : > { %p872_p10 = pnand (!%p1506_p5), %p871_p1, %p1161_p4  ;;  %p878_p2 = scmp.lt.u32.totalorder (!%p1506_p5), %s870_s8, %s1232_s26 }
  0x2c   : > { %p877_p7 = por (!%p1506_p5), %p876_p6, %p875_p0 }
  0x2d   : > { %p873_p11 = pneg %p872_p10 }
  0x2e   : > { %p879_p5 = por %p878_p2, %p877_p7 }
  0x30   : > { %p880_p9 = pnand %p879_p5, %p873_p11 }
  0x32   : > { %883 = shalt.err (!%p880_p9)
}
  0x33   : > { %s884_s12 = scalar_lea.vmem %s180_s4, 16  ;;  %s1070_s24 = smov [#allocation2]  }
  0x34   : > { %p885_p3 = scmp.ne.s32.totalorder %s180_s4, %s884_s12  ;;  %s888_s27 = sshll.u32 %s1070_s24, 4  ;;  %s889_s27 = int_to_ptr.vmem [resolvable:$false] %s888_s27 }
  0x35   : > { %s890_s19 = scalar_lea.vmem %s889_s27, 32  ;;  %p891_p13 = scmp.lt.s32.totalorder %s180_s4, %s889_s27 }
  0x36   : > { %p886_p1 = pnand %p885_p3, %p1161_p4  ;;  %p892_p8 = scmp.lt.s32.totalorder %s890_s19, %s884_s12 }
  0x38   : > { %p887_p10 = pneg %p886_p1  ;;  %p893_p12 = por %p892_p8, %p891_p13 }
  0x3a   : > { %p894_p0 = pnand %p893_p12, %p887_p10 }
  0x3c   : > { %897 = shalt.err (!%p894_p0)
}
  0x3d   : > { %777 = dma.hbm_to_vmem [thread:$0]  (%p1161_p4), %s1232_s26, 16, %s180_s4, %s169_s5  }
  0x3e   : > { %p1521_p9 = scmp.ne.s32.totalorder %s1516_s6, 0 }
  0x3f   : > { %s186_s23 = sand.u32 (%p1521_p9), 1, %s1044_s14   ;;  %s656_s30 = sshll.u32 (%p1521_p9), %s1182_s29, 4 }
  0x40   : > { %185 = sbr.rel (!%p1521_p9) target bundleno = 99 (0x63), region = 24  ;;  %s655_s8 = sshll.u32 (%p1521_p9), %s186_s23, 7 }
  0x41   : > { %s195_s22 = ssub.s32 (%p1521_p9), 25, %s656_s30  ;;  %s1258_s24 = scalar_lea.sflag (%p1521_p9), [#allocation6], %s186_s23 }
  0x42   : > { %p196_p3 = scmp.lt.s32.totalorder (%p1521_p9), %s195_s22, 16  ;;  %s190_s25 = scalar_lea.vmem (%p1521_p9), [#allocation5], %s655_s8 }
  0x47   : > { %s1539_s22 = smov (!%p196_p3, %s195_s22), 16 }
  0x48   : > { %s1255_s21 = sshll.u32 %s1539_s22, 7 }
  0x49   : > { %s200_s12 = ssub.s32 2048, %s1255_s21 }
  0x4a   : > { %201 = vsyncadd %s1258_s24, %s200_s12  ;;  %p658_p4 = scmp.ne.s32.totalorder %s1255_s21, 0  ;;  %s692_s6 = sshll.u32 %s1182_s29, 11 }
  0x4b   : > { %s1266_s5 = scalar_lea.hbm %s1500_s1, %s692_s6  ;;  %s206_s27 = sshll.u32 %s190_s25, 4  ;;  %s1268_s27 = int_to_ptr.vmem [resolvable:$true] %s206_s27 }
  0x4c   : > { %s898_s19 = scalar_lea.hbm %s1266_s5, %s1255_s21  ;;  %s902_s29 = scalar_lea.hbm %s1500_s1, 3200 }
  0x4d   : > { %p899_p8 = scmp.ne.s32.totalorder %s1266_s5, %s898_s19  ;;  %p903_p5 = scmp.lt.u32.totalorder %s1266_s5, %s1500_s1 }
  0x4e   : > { %p904_p11 = scmp.lt.u32.totalorder %s902_s29, %s898_s19  ;;  %p906_p7 = scmp.lt.u32.totalorder %s898_s19, %s1266_s5 }
  0x4f   : > { %p900_p12 = pnand %p899_p8, %p658_p4 }
  0x50   : > { %p905_p6 = por %p904_p11, %p903_p5 }
  0x51   : > { %p901_p13 = pneg %p900_p12 }
  0x52   : > { %p907_p2 = por %p906_p7, %p905_p6 }
  0x54   : > { %p908_p1 = pnand %p907_p2, %p901_p13 }
  0x56   : > { %911 = shalt.err (!%p908_p1)
}
  0x57   : > { %s912_s12 = scalar_lea.vmem %s1268_s27, %s1255_s21  ;;  %s1071_s25 = smov [#allocation5]  }
  0x58   : > { %p913_p10 = scmp.ne.s32.totalorder %s1268_s27, %s912_s12  ;;  %s916_s6 = sshll.u32 %s1071_s25, 4  ;;  %s917_s6 = int_to_ptr.vmem [resolvable:$false] %s916_s6 }
  0x59   : > { %s918_s26 = scalar_lea.vmem %s917_s6, 4096  ;;  %p919_p3 = scmp.lt.s32.totalorder %s1268_s27, %s917_s6 }
  0x5a   : > { %p914_p0 = pnand %p913_p10, %p658_p4  ;;  %p920_p8 = scmp.lt.s32.totalorder %s918_s26, %s912_s12 }
  0x5c   : > { %p915_p9 = pneg %p914_p0  ;;  %p921_p12 = por %p920_p8, %p919_p3 }
  0x5e   : > { %p922_p5 = pnand %p921_p12, %p915_p9 }
  0x60   : > { %925 = shalt.err (!%p922_p5)
}
  0x61   : > { %s1072_s4 = smov 128   ;;  %s1073_s19 = smov 8  }
  0x62   : > { %212 = dma.hbm_to_vmem [thread:$0]  (%p658_p4), %s1266_s5, %s1255_s21, %s1268_s27, %s1258_s24, %s1072_s4, %s1072_s4, %s1073_s19  }
  0x63 PF: > { %p662_p13 = scmp.ge.s32.totalorder %s1068_s20, 1  ;;  %p214_p11 = scmp.lt.s32.totalorder %s1068_s20, 3 }
  0x65   : > { %p215_p6 = pnand %p662_p13, %p214_p11 }
  0x66   : > { %s1298_s23 = sand.u32 (!%p215_p6), 1, %s1052_s16   ;;  %p1522_p7 = scmp.ne.s32.totalorder (!%p215_p6), %s1514_s28, 0 }
  0x67   : > { %218 = sbr.rel (%p215_p6) target bundleno = 384 (0x180), region = 28  ;;  %s221_s30 = scalar_lea.sflag (!%p215_p6), [#allocation3], %s1298_s23 }
  0x68   : > { %s223_s29 = scalar_lea.vmem (!%p215_p6), [#allocation2], %s1298_s23 }
  0x6e   : > { %1019 = dma.done.wait (%p1522_p7), %s221_s30, 16  }
  0x6f   : > { %1021 = vsyncadd (%p1522_p7), %s221_s30, 4294967280  ;;  %s228_s21 = sand.u32 1, %s1040_s13   ;;  %p1523_p4 = scmp.ne.s32.totalorder %s1517_s7, 0 }
  0x70   : > { %s663_s24 = sshll.u32 %s228_s21, 7  ;;  %s229_s5 = scalar_lea.sflag [#allocation6], %s228_s21 }
  0x71   : > { %s1307_s27 = scalar_lea.vmem [#allocation5], %s663_s24 }
  0x72   : > { %1023 = dma.done.wait (%p1523_p4), %s229_s5, 2048  }
  0x73   : > { %1025 = vsyncadd (%p1523_p4), %s229_s5, 4294965248  ;;  %s666_s8 = sshll.u32 %s1060_s18, 7  ;;  %v283_v0 = vlaneseq  ;;  %s664_s22 = sshll.u32 %s1298_s23, 2  ;;  %v1074_v1 = vmov 0.0|0.0   ;;  %vm1075_vm0 = vmmov 0   ;;  %v1076_v3 = vmov 0.0  }
  0x74   : > { %745 = vmatprep.subr.bf16.mxu0 %v1074_v1  ;;  %v1316_v2 = vstv %s666_s8  ;;  %742 = vmatprep.mubr.msk.f32.mxu0 %vm1075_vm0, %v1076_v3  ;;  %vm278_vm1 = vcmask 257024   ;;  %s1323_s28 = scalar_lea.vmem [#allocation7], %s664_s22  ;;  %v333_v14 = vld [vmem:[%s1307_s27] sm:$0xff]  ;;  %v334_v15 = vld [vmem:[%s1307_s27 + $0x8] sm:$0xff]  ;;  %v335_v16 = vld [vmem:[%s1307_s27 + $0x10] sm:$0xff]  ;;  %vm480_vm13 = vcmask 1043456  }
  0x75   : > { %v1319_v4 = vshrl.u32 %v283_v0, 7  ;;  %279 = vst.msk [vmem:[%s1323_s28] sm:$0xf] %vm278_vm1, %v1076_v3  ;;  %v746_v21 = vpack.c.bf16 %v334_v15, %v333_v14  ;;  %v336_v22 = vld [vmem:[%s1307_s27 + $0x18] sm:$0xff]  ;;  %v337_v24 = vld [vmem:[%s1307_s27 + $0x20] sm:$0xff]  ;;  %v338_v25 = vld [vmem:[%s1307_s27 + $0x28] sm:$0xff] }
  0x76   : > { %v750_v23 = vpack.c.bf16 %v336_v22, %v335_v16  ;;  %v754_v30 = vpack.c.bf16 %v338_v25, %v337_v24  ;;  %v1356_v31 = vld [vmem:[%s223_s29] ss:$0 sm:$0xff]  ;;  %v339_v32 = vld [vmem:[%s1307_s27 + $0x30] sm:$0xff]  ;;  %v341_v40 = vld [vmem:[%s1307_s27 + $0x40] sm:$0xff]  ;;  %v1077_v63 = vmov 1.0   ;;  %s263_s7 = scalar_lea.vmem [#allocation8], %s664_s22 }
  0x77   : > { %v285_v5 = vadd.s32 8, %v1319_v4  ;;  %v301_v6 = vadd.s32 %v1316_v2, %v1319_v4  ;;  %v286_v7 = vadd.s32 16, %v1319_v4  ;;  %v287_v8 = vadd.s32 24, %v1319_v4  ;;  %v340_v33 = vld [vmem:[%s1307_s27 + $0x38] sm:$0xff]  ;;  %v342_v41 = vld [vmem:[%s1307_s27 + $0x48] sm:$0xff]  ;;  %v343_v48 = vld [vmem:[%s1307_s27 + $0x50] sm:$0xff] }
  0x78   : > { %v288_v9 = vadd.s32 32, %v1319_v4  ;;  %v289_v10 = vadd.s32 40, %v1319_v4  ;;  %v290_v19 = vadd.s32 48, %v1319_v4  ;;  %v291_v20 = vadd.s32 56, %v1319_v4  ;;  %v344_v49 = vld [vmem:[%s1307_s27 + $0x58] sm:$0xff]  ;;  %v345_v55 = vld [vmem:[%s1307_s27 + $0x60] sm:$0xff] }
  0x79   : > { %v302_v11 = vadd.s32 %v1316_v2, %v285_v5  ;;  %vm317_vm2 = vcmp.lt.s32.totalorder %v301_v6, 200  ;;  %v303_v12 = vadd.s32 %v1316_v2, %v286_v7  ;;  %v304_v13 = vadd.s32 %v1316_v2, %v287_v8  ;;  %v346_v56 = vld [vmem:[%s1307_s27 + $0x68] sm:$0xff]  ;;  %v347_v60 = vld [vmem:[%s1307_s27 + $0x70] sm:$0xff]  ;;  %v348_v61 = vld [vmem:[%s1307_s27 + $0x78] sm:$0xff]  ;;  %s688_s12 = sshll.u32 %s1060_s18, 6  ;;  %s519_s25 = sshll.u32 %s263_s7, 4  ;;  %s1408_s25 = int_to_ptr.vmem [resolvable:$true] %s519_s25 }
  0x7a   : > { %v305_v17 = vadd.s32 %v1316_v2, %v288_v9  ;;  %v306_v18 = vadd.s32 %v1316_v2, %v289_v10  ;;  %v307_v26 = vadd.s32 %v1316_v2, %v290_v19  ;;  %v308_v27 = vadd.s32 %v1316_v2, %v291_v20  ;;  %s1406_s4 = scalar_lea.hbm %s1502_s3, %s688_s12  ;;  %s493_s19 = scalar_lea.sflag [#allocation9], %s1298_s23 }
  0x7b   : > { %vm318_vm3 = vcmp.lt.s32.totalorder %v302_v11, 200  ;;  %vm319_vm4 = vcmp.lt.s32.totalorder %v303_v12, 200  ;;  %vm320_vm5 = vcmp.lt.s32.totalorder %v304_v13, 200  ;;  %v292_v28 = vadd.s32 64, %v1319_v4  ;;  %s926_s30 = scalar_lea.vmem %s1408_s25, 64  ;;  %p1524_p1 = scmp.ne.s32.totalorder %s1518_s9, 0 }
  0x7c   : > { %vm747_vm6 = vmpackc.low %vm318_vm3, %vm317_vm2  ;;  %vm321_vm8 = vcmp.lt.s32.totalorder %v305_v17, 200  ;;  %vm322_vm9 = vcmp.lt.s32.totalorder %v306_v18, 200  ;;  %v293_v29 = vadd.s32 72, %v1319_v4  ;;  %vm323_vm11 = vcmp.lt.s32.totalorder %v307_v26, 200  ;;  %p927_p2 = scmp.ne.s32.totalorder %s1408_s25, %s926_s30  ;;  %s1078_s29 = smov [#allocation8]  }
  0x7d   : > { %748 = vmatpush3.bf16.msk.msra.mxu0 %vm747_vm6, %v746_v21  ;;  %vm751_vm7 = vmpackc.low %vm320_vm5, %vm319_vm4  ;;  %vm324_vm12 = vcmp.lt.s32.totalorder %v308_v27, 200  ;;  %v309_v34 = vadd.s32 %v1316_v2, %v292_v28  ;;  %v294_v36 = vadd.s32 80, %v1319_v4  ;;  %v295_v37 = vadd.s32 88, %v1319_v4  ;;  %s930_s21 = sshll.u32 %s1078_s29, 4  ;;  %s931_s21 = int_to_ptr.vmem [resolvable:$false] %s930_s21 }
  0x7e   : > { %749 = vmatprep.subr.bf16.mxu0 %v1074_v1  ;;  %vm755_vm10 = vmpackc.low %vm322_vm9, %vm321_vm8  ;;  %v310_v35 = vadd.s32 %v1316_v2, %v293_v29  ;;  %vm402_vm14 = vcmp.eq.s32.totalorder %v1319_v4, %v1356_v31  ;;  %v758_v38 = vpack.c.bf16 %v340_v33, %v339_v32  ;;  %v296_v42 = vadd.s32 96, %v1319_v4  ;;  %p928_p10 = pnand %p927_p2, %p1524_p1  ;;  %s932_s24 = scalar_lea.vmem %s931_s21, 128 }
  0x7f   : > { %v668_v39 = vsel %vm402_vm14, 1.0, %v1076_v3  ;;  %vm759_vm15 = vmpackc.low %vm324_vm12, %vm323_vm11  ;;  %v297_v43 = vadd.s32 104, %v1319_v4  ;;  %vm325_vm0 = vcmp.lt.s32.totalorder %v309_v34, 200  ;;  %v311_v45 = vadd.s32 %v1316_v2, %v294_v36  ;;  %p933_p9 = scmp.lt.s32.totalorder %s1408_s25, %s931_s21  ;;  %p934_p3 = scmp.lt.s32.totalorder %s932_s24, %s926_s30 }
  0x80   : > { %v481_v44 = vsel %vm480_vm13, %v668_v39, 0.0  ;;  %vm326_vm2 = vcmp.lt.s32.totalorder %v310_v35, 200  ;;  %v312_v46 = vadd.s32 %v1316_v2, %v295_v37  ;;  %v762_v47 = vpack.c.bf16 %v342_v41, %v341_v40  ;;  %p929_p0 = pneg %p928_p10 }
  0x81   : > { %752 = vmatpush3.bf16.msk.msra.mxu0 %vm751_vm7, %v750_v23  ;;  %482 = vadd.xlane.f32.xlu0 %v481_v44  ;;  %vm763_vm3 = vmpackc.low %vm326_vm2, %vm325_vm0  ;;  %v313_v50 = vadd.s32 %v1316_v2, %v296_v42  ;;  %v314_v51 = vadd.s32 %v1316_v2, %v297_v43  ;;  %vm327_vm4 = vcmp.lt.s32.totalorder %v311_v45, 200  ;;  %v298_v52 = vadd.s32 112, %v1319_v4  ;;  %p935_p8 = por %p934_p3, %p933_p9 }
  0x82   : > { %753 = vmatprep.subr.bf16.mxu0 %v1074_v1  ;;  %vm328_vm5 = vcmp.lt.s32.totalorder %v312_v46, 200  ;;  %v299_v53 = vadd.s32 120, %v1319_v4  ;;  %v766_v54 = vpack.c.bf16 %v344_v49, %v343_v48  ;;  %v770_v59 = vpack.c.bf16 %v346_v56, %v345_v55 }
  0x83   : > { %vm767_vm6 = vmpackc.low %vm328_vm5, %vm327_vm4  ;;  %vm329_vm7 = vcmp.lt.s32.totalorder %v313_v50, 200  ;;  %vm330_vm8 = vcmp.lt.s32.totalorder %v314_v51, 200  ;;  %v315_v57 = vadd.s32 %v1316_v2, %v298_v52  ;;  %v774_v62 = vpack.c.bf16 %v348_v61, %v347_v60  ;;  %p936_p12 = pnand %p935_p8, %p929_p0 }
  0x84   : > { %v316_v58 = vadd.s32 %v1316_v2, %v299_v53  ;;  %vm771_vm9 = vmpackc.low %vm330_vm8, %vm329_vm7  ;;  %vm280_vm13 = vcmask 3072  }
  0x85   : > { %756 = vmatpush3.bf16.msk.msra.mxu0 %vm755_vm10, %v754_v30  ;;  %vm331_vm10 = vcmp.lt.s32.totalorder %v315_v57, 200  ;;  %281 = vst.msk [vmem:[%s263_s7] sm:$0xf] %vm280_vm13, %v1076_v3 }
  0x86   : > { %757 = vmatprep.subr.bf16.mxu0 %v1074_v1  ;;  %vm332_vm11 = vcmp.lt.s32.totalorder %v316_v58, 200 }
  0x87   : > { %vm775_vm12 = vmpackc.low %vm332_vm11, %vm331_vm10 }
  0x89   : > { %760 = vmatpush3.bf16.msk.msra.mxu0 %vm759_vm15, %v758_v38 }
  0x8a   : > { %761 = vmatprep.subr.bf16.mxu0 %v1074_v1 }
  0x8c   : > { %v479_v0 = vld [vmem:[%s263_s7] sm:$0xf] }
  0x8d   : > { %764 = vmatpush3.bf16.msk.msra.mxu0 %vm763_vm3, %v762_v47 }
  0x8e   : > { %765 = vmatprep.subr.bf16.mxu0 %v1074_v1 }
  0x91   : > { %768 = vmatpush3.bf16.msk.msra.mxu0 %vm767_vm6, %v766_v54 }
  0x92   : > { %769 = vmatprep.subr.bf16.mxu0 %v1074_v1 }
  0x95   : > { %772 = vmatpush3.bf16.msk.msra.mxu0 %vm771_vm9, %v770_v59 }
  0x96   : > { %773 = vmatprep.subr.bf16.mxu0 %v1074_v1 }
  0x99   : > { %776 = vmatpush3.bf16.msk.msra.mxu0 %vm775_vm12, %v774_v62 }
  0x9c   : > { %743 = vmatmul.mubr.msk.f32.vlgmr.msra.gmra.mrb[0].mxu0 %vm402_vm14, %v1077_v63 }
 0x10e   : > { %v483_v2 = vpop.xlane.xlu0 %482 }
 0x10f   : > { %v484_v5 = vadd.f32 %v483_v2, %v479_v0 }
 0x111   : > { %486 = vst.msk [vmem:[%s263_s7] sm:$0xf] %vm280_vm13, %v484_v5 }
 0x112   : > { %939 = shalt.err (!%p936_p12)
}
 0x113   : > { %s940_s5 = scalar_lea.hbm %s1406_s4, 64  ;;  %s944_s22 = scalar_lea.hbm %s1502_s3, 128 }
 0x114   : > { %p941_p5 = scmp.ne.s32.totalorder %s1406_s4, %s940_s5  ;;  %p945_p6 = scmp.lt.u32.totalorder %s1406_s4, %s1502_s3 }
 0x115   : > { %p946_p7 = scmp.lt.u32.totalorder %s944_s22, %s940_s5  ;;  %p948_p2 = scmp.lt.u32.totalorder %s940_s5, %s1406_s4 }
 0x116   : > { %p942_p13 = pnand %p941_p5, %p1524_p1 }
 0x117   : > { %p947_p4 = por %p946_p7, %p945_p6 }
 0x118   : > { %p943_p11 = pneg %p942_p13 }
 0x119   : > { %p949_p10 = por %p948_p2, %p947_p4 }
 0x11b   : > { %p950_p0 = pnand %p949_p10, %p943_p11 }
 0x11d   : > { %953 = shalt.err (!%p950_p0)
}
 0x11e   : > { %781 = dma.vmem_to_hbm [thread:$0]  (%p1524_p1), %s1408_s25, 64, %s1406_s4, %s493_s19   ;;  %v405_v1 = vld [vmem:[%s1323_s28] sm:$0xf] }
 0x11f   : > { %s506_s26 = sshll.u32 %s1323_s28, 4  ;;  %s1439_s21 = scalar_lea.hbm %s1501_s2, %s688_s12  ;;  %s1441_s26 = int_to_ptr.vmem [resolvable:$true] %s506_s26 }
 0x120   : > { %s488_s24 = scalar_lea.sflag [#allocation4], %s1298_s23  ;;  %s954_s25 = scalar_lea.vmem %s1441_s26, 64 }
 0x121   : > { %p955_p9 = scmp.ne.s32.totalorder %s1441_s26, %s954_s25  ;;  %s1079_s4 = smov [#allocation7]  }
 0x122   : > { %s958_s18 = sshll.u32 %s1079_s4, 4  ;;  %s959_s18 = int_to_ptr.vmem [resolvable:$false] %s958_s18 }
 0x123   : > { %p956_p3 = pnand %p955_p9, %p1524_p1  ;;  %s960_s19 = scalar_lea.vmem %s959_s18, 128 }
 0x124   : > { %p961_p12 = scmp.lt.s32.totalorder %s1441_s26, %s959_s18  ;;  %p962_p5 = scmp.lt.s32.totalorder %s960_s19, %s954_s25 }
 0x125   : > { %p957_p8 = pneg %p956_p3 }
 0x126   : > { %p963_p13 = por %p962_p5, %p961_p12 }
 0x128   : > { %p964_p11 = pnand %p963_p13, %p957_p8 }
 0x16f   : > { %v472_v3 = vpop.f32.mrb[0].mxu0 }
 0x170   : > { %v476_v4 = vadd.f32 %v472_v3, %v405_v1  ;;  %v744_v6 = vpop.f32.mrb[1].mxu0 }
 0x172   : > { %478 = vst.msk [vmem:[%s1323_s28] sm:$0xf] %vm278_vm1, %v476_v4 }
 0x173   : > { %967 = shalt.err (!%p964_p11)
}
 0x174   : > { %s968_s23 = scalar_lea.hbm %s1439_s21, 64  ;;  %s972_s5 = scalar_lea.hbm %s1501_s2, 128 }
 0x175   : > { %p969_p6 = scmp.ne.s32.totalorder %s1439_s21, %s968_s23  ;;  %p973_p2 = scmp.lt.u32.totalorder %s1439_s21, %s1501_s2 }
 0x176   : > { %p974_p10 = scmp.lt.u32.totalorder %s972_s5, %s968_s23  ;;  %p976_p9 = scmp.lt.u32.totalorder %s968_s23, %s1439_s21 }
 0x177   : > { %p970_p7 = pnand %p969_p6, %p1524_p1 }
 0x178   : > { %p975_p0 = por %p974_p10, %p973_p2 }
 0x179   : > { %p971_p4 = pneg %p970_p7 }
 0x17a   : > { %p977_p3 = por %p976_p9, %p975_p0 }
 0x17c   : > { %p978_p8 = pnand %p977_p3, %p971_p4 }
 0x17e   : > { %981 = shalt.err (!%p978_p8)
}
 0x17f   : > { %780 = dma.vmem_to_hbm [thread:$0]  (%p1524_p1), %s1441_s26, 64, %s1439_s21, %s488_s24  }
 0x180 PF: > { %s531_s22 = sand.u32 1, %s1048_s15   ;;  %p1525_p12 = scmp.ne.s32.totalorder %s1520_s11, 0 }
 0x181   : > { %p1526_p5 = scmp.ge.s32.totalorder %s1068_s20, 2  ;;  %s532_s7 = scalar_lea.sflag [#allocation4], %s531_s22 }
 0x183   : > { %p785_p13 = pnand %p1526_p5, %p1525_p12 }
 0x185   : > { %1027 = dma.done.wait (!%p785_p13), %s532_s7, 64  }
 0x186   : > { %1029 = vsyncadd (!%p785_p13), %s532_s7, 4294967232  ;;  %s541_s6 = scalar_lea.sflag [#allocation9], %s531_s22 }
 0x187   : > { %1031 = dma.done.wait (!%p785_p13), %s541_s6, 64  }
 0x188   : > { %1033 = vsyncadd (!%p785_p13), %s541_s6, 4294967232  ;;  %s26_s20 = sadd.s32 1, %s1068_s20   ;;  %s1527_s9 = sld [smem:[#allocation16_spill]] }
 0x189   : > { %p23_p11 = scmp.ge.s32.totalorder %s26_s20, 4   ;;  %s1528_s18 = sld [smem:[#allocation14_spill]] }
 0x18a   : > { %s1529_s19 = sld [smem:[#allocation15_spill]]  ;;  %s1530_s12 = smov %s1040_s13 }
 0x18b   : > { %s1531_s13 = smov %s1044_s14  ;;  %s1532_s14 = smov %s1215_s10 }
 0x18c   : > { %s1533_s15 = smov %s1052_s16  ;;  %s1534_s16 = smov %s1056_s17 }
 0x18d   :  { %25 = sbr.rel (!%p23_p11) target bundleno = 12 (0xc), region = 107 }
 0x18e   : > { %s1535_s17 = smov %s1527_s9 }
 0x194   :  { %546 = vsyncpa [#allocation3], 1 }
 0x195   :  { %548 = vsyncpa [#allocation3 + $0x1], 1 }
 0x196   :  { %549 = vsyncpa [#allocation6], 1 }
 0x197   :  { %551 = vsyncpa [#allocation6 + $0x1], 1 }
 0x198   :  { %552 = vsyncpa [#allocation4], 1 }
 0x199   :  { %554 = vsyncpa [#allocation4 + $0x1], 1 }
 0x19a   :  { %555 = vsyncpa [#allocation9], 1 }
 0x19b   :  { %557 = vsyncpa [#allocation9 + $0x1], 1 }

</bundles_post_ra>
